<compile_context>
chip_gen: v7x
topology: tpu7x:2x2x1
jax: 0.10.0
libtpu: 0.0.40
codegen_flags: <defaults>
</compile_context>

<pallas_src>
import functools

import jax
import jax.numpy as jnp
from jax.experimental import pallas as pl
from jax.experimental.pallas import tpu as pltpu

_MIB = 1024 * 1024


def _round_up(x, m):
    return (x + m - 1) // m * m


# ----------------------------------------------------------------------------
# Fused Pallas kernel: GIN encoder (all layers) + global add pool + proj_head.
# ----------------------------------------------------------------------------
def _fused_simclr_kernel(num_layers, np_rows, adjp_ref, deg_ref, *refs):
    o_ref = refs[-1]                                 # (GP, EP) f32
    prm = refs[:-1]
    enc = [prm[4 * l: 4 * l + 4] for l in range(num_layers)]
    wp1_ref, bp1_ref, wp2_ref, bp2_ref = prm[4 * num_layers:]

    f32, bf16 = jnp.float32, jnp.bfloat16
    gp_rows = adjp_ref.shape[0] - np_rows

    # ---- encoder layer 0 (node feature == 1.0, i.e. x is None) --------------
    # agg0 = 1 + in_degree (host-precomputed, O(E)); a (N,1)@(1,H) K=1 matmul
    # would waste the MXU, so broadcast w1's single f32 row on the VPU instead.
    w1_row_ref, b1_ref, w2_ref, b2_ref = enc[0]
    agg0 = deg_ref[...] + 1.0                                    # (NP, 1) f32
    h = agg0 * w1_row_ref[...] + b1_ref[...]                     # (NP, HP) VPU
    h = jnp.maximum(h, 0.0)                                      # MLP ReLU
    h = jnp.dot(h.astype(bf16), w2_ref[...], preferred_element_type=f32)
    h = jnp.maximum(h + b2_ref[...], 0.0)                        # post-conv F.relu
    h_bf = h.astype(bf16)                                        # one cast per layer

    # ---- encoder layers 1..L-1 -----------------------------------------------
    # One stacked matmul per layer: rows [:NP] are the neighbor sums, rows [NP:]
    # are the previous layer's global-add-pooled features.
    pooled_blocks = []
    for l in range(1, num_layers):
        w1_ref, b1_ref, w2_ref, b2_ref = enc[l]
        full = jnp.dot(adjp_ref[...], h_bf, preferred_element_type=f32)
        pooled_blocks.append(full[np_rows:])                     # pool @ h_{l-1}
        agg = h + full[:np_rows]                                 # (1+eps)*h + sum_nbr, eps=0
        h = jnp.dot(agg.astype(bf16), w1_ref[...], preferred_element_type=f32)
        h = jnp.maximum(h + b1_ref[...], 0.0)
        h = jnp.dot(h.astype(bf16), w2_ref[...], preferred_element_type=f32)
        h = jnp.maximum(h + b2_ref[...], 0.0)
        h_bf = h.astype(bf16)

    # Last layer's pooled features: only the pooling rows of the stacked operand.
    pool_mat = adjp_ref[pl.ds(np_rows, gp_rows), :]
    pooled_blocks.append(jnp.dot(pool_mat, h_bf, preferred_element_type=f32))

    # ---- proj_head: Linear -> ReLU -> Linear ---------------------------------
    # Single K = L*128 matmul (fills MXU depth on v6e/v7x) replaces the per-layer
    # concat + L separate K=128 GEMMs.
    pooled_cat = jnp.concatenate(pooled_blocks, axis=-1)         # (GP, L*HP) f32
    z = jnp.dot(pooled_cat.astype(bf16), wp1_ref[...], preferred_element_type=f32)
    z = jnp.maximum(z + bp1_ref[...], 0.0)
    out = jnp.dot(z.astype(bf16), wp2_ref[...], preferred_element_type=f32)
    o_ref[...] = (out + bp2_ref[...]).astype(o_ref.dtype)


def _chip_vmem_capacity_bytes():
    # Per-TensorCore VMEM: 128 MiB on v5e/v6e, 64 MiB on v7x.
    try:
        return int(pltpu.get_tpu_info().vmem_capacity_bytes)
    except Exception:
        return 64 * _MIB                      # conservative fallback (v7x budget)


def _vmem_padded_bytes(shape, dtype):
    itemsize = jnp.dtype(dtype).itemsize
    sublane = {1: 32, 2: 16, 4: 8}.get(itemsize, 8)
    rows = _round_up(int(shape[-2]), sublane) if len(shape) >= 2 else 1
    cols = _round_up(int(shape[-1]), 128)
    lead = 1
    for d in shape[:-2]:
        lead *= int(d)
    return lead * rows * cols * itemsize


def fused_simclr_call(adjp, deg, flat_params, num_layers, np_rows, out_rows, out_cols):
    inputs = [adjp, deg] + list(flat_params)
    out_shape = (out_rows, out_cols)
    in_bytes = sum(_vmem_padded_bytes(a.shape, a.dtype) for a in inputs)
    # Live temporaries: a handful of (NP,128) f32/bf16 activations, one stacked
    # (NP+GP,128) f32 matmul result, the pooled concat, plus compiler scratch.
    tmp_bytes = 10 * np_rows * 128 * 4 + 4 * _MIB
    need = in_bytes + _vmem_padded_bytes(out_shape, jnp.float32) + tmp_bytes
    cap = _chip_vmem_capacity_bytes() - 8 * _MIB
    if need > cap:
        # TODO(synk): above the resident cutoff, stream (TM, NP) row tiles of the
        # stacked adjacency with a row-tiled grid (dimension_semantics="parallel"
        # to shard across v7x's two TensorCores) while keeping h / weights / z in
        # VMEM scratch; unnecessary at these sizes.
        raise ValueError(
            f"graph too large for the VMEM-resident fused kernel: needs "
            f"~{need // _MIB} MiB, chip budget ~{cap // _MIB} MiB")
    vmem_limit = int(min(max(need, 32 * _MIB), cap))

    # Single-shot kernel: whole-array VMEM operands, no grid, no double-buffering.
    vspec = pl.BlockSpec(memory_space=pltpu.MemorySpace.VMEM)
    return pl.pallas_call(
        functools.partial(_fused_simclr_kernel, num_layers, np_rows),
        out_shape=jax.ShapeDtypeStruct(out_shape, jnp.float32),
        in_specs=[vspec] * len(inputs),
        out_specs=vspec,
        compiler_params=pltpu.CompilerParams(vmem_limit_bytes=vmem_limit),
    )(*inputs)


# ----------------------------------------------------------------------------
# Parameter init (matches simclr.init_emb: xavier_uniform_ weights, zero bias).
# ----------------------------------------------------------------------------
def xavier_uniform(key, out_features, in_features):
    limit = (6.0 / (in_features + out_features)) ** 0.5
    w_pt = jax.random.uniform(key, (out_features, in_features), jnp.float32,
                              -limit, limit)
    return w_pt.T  # stored as (in, out)


def make_linear_params(key, in_features, out_features):
    return (xavier_uniform(key, out_features, in_features),
            jnp.zeros((1, out_features), jnp.float32))


def init_simclr_params(key, hidden_dim, num_layers, in_feat_dim=1):
    embedding_dim = hidden_dim * num_layers          # args.encoder == 'GIN'
    keys = jax.random.split(key, 2 * num_layers + 2)
    encoder = []
    d_in = in_feat_dim
    for l in range(num_layers):
        w1, b1 = make_linear_params(keys[2 * l], d_in, hidden_dim)
        w2, b2 = make_linear_params(keys[2 * l + 1], hidden_dim, hidden_dim)
        encoder.append((w1, b1, w2, b2))
        d_in = hidden_dim
    pw1, pb1 = make_linear_params(keys[-2], embedding_dim, embedding_dim)
    pw2, pb2 = make_linear_params(keys[-1], embedding_dim, embedding_dim)
    return {"encoder": encoder,
            "proj_head": {"w1": pw1, "b1": pb1, "w2": pw2, "b2": pb2}}


# ----------------------------------------------------------------------------
# Packing (host side, once): pad to 128 lanes, cast MXU operands to bf16.
# ----------------------------------------------------------------------------
def _pad_w(w, rows, cols):
    out = jnp.zeros((rows, cols), jnp.float32).at[: w.shape[0], : w.shape[1]].set(w)
    return out.astype(jnp.bfloat16)


def _pad_b(b, cols):
    return jnp.zeros((1, cols), jnp.float32).at[:, : b.shape[1]].set(b)


def pack_params(params, hidden_dim, num_layers):
    """Pad + bf16-cast the weights once, outside the jitted forward."""
    H = hidden_dim
    HP = max(128, _round_up(H, 128))
    E = H * num_layers
    EP = max(128, _round_up(E, 128))
    flat = []
    for l, (w1, b1, w2, b2) in enumerate(params["encoder"]):
        if l == 0:
            # layer 0 first Linear has in_features == 1: its single row is applied
            # on the VPU (broadcast), so it stays f32 (never touches the MXU).
            flat.append(_pad_b(w1, HP))
        else:
            flat.append(_pad_w(w1, HP, HP))
        flat += [_pad_b(b1, HP), _pad_w(w2, HP, HP), _pad_b(b2, HP)]
    p = params["proj_head"]
    # proj_head Linear1 packed as ONE (L*HP, EP) operand: row block l multiplies
    # the layer-l lane block of the in-kernel pooled concat buffer.
    wp1 = jnp.zeros((num_layers * HP, EP), jnp.float32)
    for l in range(num_layers):
        wp1 = wp1.at[l * HP:l * HP + H, :E].set(p["w1"][l * H:(l + 1) * H, :])
    flat += [wp1.astype(jnp.bfloat16), _pad_b(p["b1"], EP),
             _pad_w(p["w2"], EP, EP), _pad_b(p["b2"], EP)]
    return tuple(flat)


def pack_graph(edge_index, batch, num_graphs, n_nodes):
    """Stacked (message | pooling) operand and host-precomputed node in-degrees.

    Rows [0, NP): M[d, s] = #edges s->d  (GIN sum aggregation as a dense matmul).
    Rows [NP, NP+GP): P[g, n] = 1 iff node n belongs to graph g (global add pool).
    Zero rows/cols keep padded nodes/graphs inert. Built directly in bf16
    (0/1 entries and small edge counts are exact; >256 parallel edges between a
    node pair would round).
    """
    NP = max(128, _round_up(n_nodes, 128))
    GP = max(16, _round_up(num_graphs, 16))        # bf16 sublane tile is 16
    src, dst = edge_index[0], edge_index[1]
    adjp = jnp.zeros((NP + GP, NP), jnp.bfloat16)
    adjp = adjp.at[dst, src].add(1.0)
    adjp = adjp.at[NP + batch, jnp.arange(n_nodes)].set(1.0)
    deg = jnp.zeros((NP,), jnp.float32).at[dst].add(1.0).reshape(NP, 1)
    return adjp, deg, NP, GP


# ----------------------------------------------------------------------------
# Forward.
# ----------------------------------------------------------------------------
@functools.partial(jax.jit, static_argnames=("num_graphs", "hidden_dim", "num_layers"))
def simclr_forward(flat_params, x, edge_index, batch, num_graphs, hidden_dim,
                   num_layers):
    # Reference: `if x is None: x = torch.ones(batch.shape[0])` -> one constant
    # scalar feature per node; that path is what the fused kernel implements.
    if x is not None:
        # TODO(synk): general node-feature path (x is not None) is not fused.
        raise NotImplementedError("only the x=None (ones) feature path is fused")
    n_nodes = batch.shape[0]
    embedding_dim = hidden_dim * num_layers
    EP = max(128, _round_up(embedding_dim, 128))
    adjp, deg, NP, GP = pack_graph(edge_index, batch, num_graphs, n_nodes)
    out = fused_simclr_call(adjp, deg, flat_params, num_layers, NP, GP, EP)
    return out[:num_graphs, :embedding_dim]


def reference_forward(params, edge_index, batch, num_graphs):
    """Pure-JAX f32 reference of the same GIN stand-in, for a sanity check."""
    # TODO(synk): the encoder is an externally injected nn.Module in the original
    # (GIN from GraphCL incl. BatchNorm); a minimal sum-aggregation GIN stand-in
    # is used here, identical to what the kernel implements.
    n_nodes = batch.shape[0]
    src, dst = edge_index[0], edge_index[1]
    h = jnp.ones((n_nodes, 1), jnp.float32)
    per_layer = []
    for (w1, b1, w2, b2) in params["encoder"]:
        neigh = jax.ops.segment_sum(h[src], dst, num_segments=n_nodes)
        agg = h + neigh
        h = jnp.maximum(agg @ w1 + b1, 0.0)
        h = jnp.maximum(h @ w2 + b2, 0.0)
        per_layer.append(h)
    pooled = jnp.concatenate(
        [jax.ops.segment_sum(hl, batch, num_segments=num_graphs) for hl in per_layer],
        axis=1)
    p = params["proj_head"]
    z = jnp.maximum(pooled @ p["w1"] + p["b1"], 0.0)
    return z @ p["w2"] + p["b2"]


# ----------------------------------------------------------------------------
# Example run.
# ----------------------------------------------------------------------------
if __name__ == "__main__":
    hidden_dim = 32
    num_layers = 2
    num_graphs = 4
    nodes_per_graph = 4

    key = jax.random.PRNGKey(0)
    params = init_simclr_params(key, hidden_dim, num_layers, in_feat_dim=1)
    flat_params = pack_params(params, hidden_dim, num_layers)   # once, outside jit

    # Deterministic graph structure: a 4-node ring per graph (bidirected edges).
    edges = []
    for g in range(num_graphs):
        base = g * nodes_per_graph
        for i in range(nodes_per_graph):
            a = base + i
            b = base + (i + 1) % nodes_per_graph
            edges.append((a, b))
            edges.append((b, a))
    edge_index = jnp.asarray(edges, dtype=jnp.int32).T          # (2, num_edges)
    batch = jnp.repeat(jnp.arange(num_graphs, dtype=jnp.int32), nodes_per_graph)

    y = simclr_forward(flat_params, None, edge_index, batch,
                       num_graphs=num_graphs, hidden_dim=hidden_dim,
                       num_layers=num_layers)
    y = jax.block_until_ready(y)

    assert y.shape == (num_graphs, hidden_dim * num_layers)
    assert y.dtype == jnp.float32

    # Sanity check vs. the f32 pure-JAX reference (bf16 matmul inputs -> loose tol).
    y_ref = reference_forward(params, edge_index, batch, num_graphs)
    err = jnp.max(jnp.abs(y - y_ref)) / (jnp.max(jnp.abs(y_ref)) + 1e-6)
    assert float(err) < 0.08, f"mismatch vs f32 reference: rel err {float(err):.4f}"
    print("KERNEL_OK")
</pallas_src>

<mosaic_0001>
module attributes {stable_mosaic.version = 11 : i64} {
  func.func private @main(%arg0: i32) attributes {dimension_semantics = [#tpu.dimension_semantics<core_parallel>], iteration_bounds = array<i64: 2>, tpu.core_type = #tpu.core_type<sc_scalar_subcore>, window_params = []} {
    return
  }
}

module attributes {stable_mosaic.version = 11 : i64} {
  func.func private @main(%arg0: i32) attributes {dimension_semantics = [#tpu.dimension_semantics<core_parallel>], iteration_bounds = array<i64: 2>, tpu.core_type = #tpu.core_type<sc_scalar_subcore>, window_params = []} {
    return
  }
}

module attributes {stable_mosaic.version = 11 : i64} {
  func.func @_fused_simclr_kernel(%arg0: memref<144x128xbf16, #tpu.memory_space<vmem>>, %arg1: memref<128x1xf32, #tpu.memory_space<vmem>>, %arg2: memref<1x128xf32, #tpu.memory_space<vmem>>, %arg3: memref<1x128xf32, #tpu.memory_space<vmem>>, %arg4: memref<128x128xbf16, #tpu.memory_space<vmem>>, %arg5: memref<1x128xf32, #tpu.memory_space<vmem>>, %arg6: memref<128x128xbf16, #tpu.memory_space<vmem>>, %arg7: memref<1x128xf32, #tpu.memory_space<vmem>>, %arg8: memref<128x128xbf16, #tpu.memory_space<vmem>>, %arg9: memref<1x128xf32, #tpu.memory_space<vmem>>, %arg10: memref<256x128xbf16, #tpu.memory_space<vmem>>, %arg11: memref<1x128xf32, #tpu.memory_space<vmem>>, %arg12: memref<128x128xbf16, #tpu.memory_space<vmem>>, %arg13: memref<1x128xf32, #tpu.memory_space<vmem>>, %arg14: memref<16x128xf32, #tpu.memory_space<vmem>>) attributes {dimension_semantics = [], scalar_prefetch = 0 : i64, scratch_operands = 0 : i64, tpu.core_type = #tpu.core_type<tc>} {
    %c0 = arith.constant 0 : index
    %c0_0 = arith.constant 0 : index
    %0 = vector.load %arg1[%c0, %c0_0] : memref<128x1xf32, #tpu.memory_space<vmem>>, vector<128x1xf32>
    %cst = arith.constant 1.000000e+00 : f32
    %1 = vector.broadcast %cst : f32 to vector<128x1xf32>
    %2 = arith.addf %0, %1 : vector<128x1xf32>
    %c0_1 = arith.constant 0 : index
    %c0_2 = arith.constant 0 : index
    %3 = vector.load %arg2[%c0_1, %c0_2] : memref<1x128xf32, #tpu.memory_space<vmem>>, vector<1x128xf32>
    %4 = vector.broadcast %2 : vector<128x1xf32> to vector<128x128xf32>
    %5 = vector.broadcast %3 : vector<1x128xf32> to vector<128x128xf32>
    %6 = arith.mulf %4, %5 : vector<128x128xf32>
    %c0_3 = arith.constant 0 : index
    %c0_4 = arith.constant 0 : index
    %7 = vector.load %arg3[%c0_3, %c0_4] : memref<1x128xf32, #tpu.memory_space<vmem>>, vector<1x128xf32>
    %8 = vector.broadcast %7 : vector<1x128xf32> to vector<128x128xf32>
    %9 = arith.addf %6, %8 : vector<128x128xf32>
    %cst_5 = arith.constant 0.000000e+00 : f32
    %10 = vector.broadcast %cst_5 : f32 to vector<128x128xf32>
    %11 = arith.maximumf %9, %10 : vector<128x128xf32>
    %12 = arith.truncf %11 : vector<128x128xf32> to vector<128x128xbf16>
    %c0_6 = arith.constant 0 : index
    %c0_7 = arith.constant 0 : index
    %13 = vector.load %arg4[%c0_6, %c0_7] : memref<128x128xbf16, #tpu.memory_space<vmem>>, vector<128x128xbf16>
    %cst_8 = arith.constant dense<0.000000e+00> : vector<128x128xf32>
    %14 = tpu.matmul %12, %13, %cst_8 {dimension_numbers = #tpu.dot_dimension_numbers<[1], [0], [0], [1], [0, 0, 1, 1], [], []>} : vector<128x128xbf16>, vector<128x128xbf16>, vector<128x128xf32> -> vector<128x128xf32>
    %c0_9 = arith.constant 0 : index
    %c0_10 = arith.constant 0 : index
    %15 = vector.load %arg5[%c0_9, %c0_10] : memref<1x128xf32, #tpu.memory_space<vmem>>, vector<1x128xf32>
    %16 = vector.broadcast %15 : vector<1x128xf32> to vector<128x128xf32>
    %17 = arith.addf %14, %16 : vector<128x128xf32>
    %cst_11 = arith.constant 0.000000e+00 : f32
    %18 = vector.broadcast %cst_11 : f32 to vector<128x128xf32>
    %19 = arith.maximumf %17, %18 : vector<128x128xf32>
    %20 = arith.truncf %19 : vector<128x128xf32> to vector<128x128xbf16>
    %c0_12 = arith.constant 0 : index
    %c0_13 = arith.constant 0 : index
    %21 = vector.load %arg0[%c0_12, %c0_13] : memref<144x128xbf16, #tpu.memory_space<vmem>>, vector<144x128xbf16>
    %cst_14 = arith.constant dense<0.000000e+00> : vector<144x128xf32>
    %22 = tpu.matmul %21, %20, %cst_14 {dimension_numbers = #tpu.dot_dimension_numbers<[1], [0], [0], [1], [0, 0, 1, 1], [], []>} : vector<144x128xbf16>, vector<128x128xbf16>, vector<144x128xf32> -> vector<144x128xf32>
    %23 = vector.extract_strided_slice %22 {offsets = [128, 0], sizes = [16, 128], strides = [1, 1]} : vector<144x128xf32> to vector<16x128xf32>
    %24 = vector.extract_strided_slice %22 {offsets = [0, 0], sizes = [128, 128], strides = [1, 1]} : vector<144x128xf32> to vector<128x128xf32>
    %25 = arith.addf %19, %24 : vector<128x128xf32>
    %26 = arith.truncf %25 : vector<128x128xf32> to vector<128x128xbf16>
    %c0_15 = arith.constant 0 : index
    %c0_16 = arith.constant 0 : index
    %27 = vector.load %arg6[%c0_15, %c0_16] : memref<128x128xbf16, #tpu.memory_space<vmem>>, vector<128x128xbf16>
    %cst_17 = arith.constant dense<0.000000e+00> : vector<128x128xf32>
    %28 = tpu.matmul %26, %27, %cst_17 {dimension_numbers = #tpu.dot_dimension_numbers<[1], [0], [0], [1], [0, 0, 1, 1], [], []>} : vector<128x128xbf16>, vector<128x128xbf16>, vector<128x128xf32> -> vector<128x128xf32>
    %c0_18 = arith.constant 0 : index
    %c0_19 = arith.constant 0 : index
    %29 = vector.load %arg7[%c0_18, %c0_19] : memref<1x128xf32, #tpu.memory_space<vmem>>, vector<1x128xf32>
    %30 = vector.broadcast %29 : vector<1x128xf32> to vector<128x128xf32>
    %31 = arith.addf %28, %30 : vector<128x128xf32>
    %cst_20 = arith.constant 0.000000e+00 : f32
    %32 = vector.broadcast %cst_20 : f32 to vector<128x128xf32>
    %33 = arith.maximumf %31, %32 : vector<128x128xf32>
    %34 = arith.truncf %33 : vector<128x128xf32> to vector<128x128xbf16>
    %c0_21 = arith.constant 0 : index
    %c0_22 = arith.constant 0 : index
    %35 = vector.load %arg8[%c0_21, %c0_22] : memref<128x128xbf16, #tpu.memory_space<vmem>>, vector<128x128xbf16>
    %cst_23 = arith.constant dense<0.000000e+00> : vector<128x128xf32>
    %36 = tpu.matmul %34, %35, %cst_23 {dimension_numbers = #tpu.dot_dimension_numbers<[1], [0], [0], [1], [0, 0, 1, 1], [], []>} : vector<128x128xbf16>, vector<128x128xbf16>, vector<128x128xf32> -> vector<128x128xf32>
    %c0_24 = arith.constant 0 : index
    %c0_25 = arith.constant 0 : index
    %37 = vector.load %arg9[%c0_24, %c0_25] : memref<1x128xf32, #tpu.memory_space<vmem>>, vector<1x128xf32>
    %38 = vector.broadcast %37 : vector<1x128xf32> to vector<128x128xf32>
    %39 = arith.addf %36, %38 : vector<128x128xf32>
    %cst_26 = arith.constant 0.000000e+00 : f32
    %40 = vector.broadcast %cst_26 : f32 to vector<128x128xf32>
    %41 = arith.maximumf %39, %40 : vector<128x128xf32>
    %42 = arith.truncf %41 : vector<128x128xf32> to vector<128x128xbf16>
    %c128 = arith.constant 128 : index
    %c0_27 = arith.constant 0 : index
    %43 = vector.load %arg0[%c128, %c0_27] : memref<144x128xbf16, #tpu.memory_space<vmem>>, vector<16x128xbf16>
    %cst_28 = arith.constant dense<0.000000e+00> : vector<16x128xf32>
    %44 = tpu.matmul %43, %42, %cst_28 {dimension_numbers = #tpu.dot_dimension_numbers<[1], [0], [0], [1], [0, 0, 1, 1], [], []>} : vector<16x128xbf16>, vector<128x128xbf16>, vector<16x128xf32> -> vector<16x128xf32>
    %45 = tpu.concatenate %23, %44 in 1 : vector<16x128xf32>, vector<16x128xf32> -> vector<16x256xf32>
    %46 = arith.truncf %45 : vector<16x256xf32> to vector<16x256xbf16>
    %c0_29 = arith.constant 0 : index
    %c0_30 = arith.constant 0 : index
    %47 = vector.load %arg10[%c0_29, %c0_30] : memref<256x128xbf16, #tpu.memory_space<vmem>>, vector<256x128xbf16>
    %cst_31 = arith.constant dense<0.000000e+00> : vector<16x128xf32>
    %48 = tpu.matmul %46, %47, %cst_31 {dimension_numbers = #tpu.dot_dimension_numbers<[1], [0], [0], [1], [0, 0, 1, 1], [], []>} : vector<16x256xbf16>, vector<256x128xbf16>, vector<16x128xf32> -> vector<16x128xf32>
    %c0_32 = arith.constant 0 : index
    %c0_33 = arith.constant 0 : index
    %49 = vector.load %arg11[%c0_32, %c0_33] : memref<1x128xf32, #tpu.memory_space<vmem>>, vector<1x128xf32>
    %50 = vector.broadcast %49 : vector<1x128xf32> to vector<16x128xf32>
    %51 = arith.addf %48, %50 : vector<16x128xf32>
    %cst_34 = arith.constant 0.000000e+00 : f32
    %52 = vector.broadcast %cst_34 : f32 to vector<16x128xf32>
    %53 = arith.maximumf %51, %52 : vector<16x128xf32>
    %54 = arith.truncf %53 : vector<16x128xf32> to vector<16x128xbf16>
    %c0_35 = arith.constant 0 : index
    %c0_36 = arith.constant 0 : index
    %55 = vector.load %arg12[%c0_35, %c0_36] : memref<128x128xbf16, #tpu.memory_space<vmem>>, vector<128x128xbf16>
    %cst_37 = arith.constant dense<0.000000e+00> : vector<16x128xf32>
    %56 = tpu.matmul %54, %55, %cst_37 {dimension_numbers = #tpu.dot_dimension_numbers<[1], [0], [0], [1], [0, 0, 1, 1], [], []>} : vector<16x128xbf16>, vector<128x128xbf16>, vector<16x128xf32> -> vector<16x128xf32>
    %c0_38 = arith.constant 0 : index
    %c0_39 = arith.constant 0 : index
    %57 = vector.load %arg13[%c0_38, %c0_39] : memref<1x128xf32, #tpu.memory_space<vmem>>, vector<1x128xf32>
    %58 = vector.broadcast %57 : vector<1x128xf32> to vector<16x128xf32>
    %59 = arith.addf %56, %58 : vector<16x128xf32>
    %c0_40 = arith.constant 0 : index
    %c0_41 = arith.constant 0 : index
    %60 = vector.load %arg14[%c0_40, %c0_41] : memref<16x128xf32, #tpu.memory_space<vmem>>, vector<16x128xf32>
    tpu.vector_store %arg14[%c0_40, %c0_41], %59 {strides = array<i32>} : memref<16x128xf32, #tpu.memory_space<vmem>>, vector<16x128xf32>,
    return
  }
}

</mosaic_0001>

<bundles_post_ra>
// kernel: simclr_forward.1
= control target key start
LH: loop header
LB: loop body
LE: loop exit
PB: predicated region body
PF: predicated region fallthrough
CT: control target
= control target key end

     0   :  { %v1766_v0 = vmov 0   ;;  %vm1768_vm0 = vmmov 0   ;;  %s2306_s1 = inlined_call_operand.vmem [shape: f32[128,1], index: 1, kind: input, shape index: {}]   ;;  %s2307_s4 = inlined_call_operand.vmem [shape: bf16[128,128], index: 4, kind: input, shape index: {}]   ;;  %s2308_s2 = inlined_call_operand.vmem [shape: f32[1,128], index: 2, kind: input, shape index: {}]   ;;  %s2309_s3 = inlined_call_operand.vmem [shape: f32[1,128], index: 3, kind: input, shape index: {}]   ;;  %s2310_s0 = inlined_call_operand.vmem [shape: bf16[144,128], index: 0, kind: input, shape index: {}]   ;;  %s2311_s6 = inlined_call_operand.vmem [shape: bf16[128,128], index: 6, kind: input, shape index: {}]   ;;  %s2312_s5 = inlined_call_operand.vmem [shape: f32[1,128], index: 5, kind: input, shape index: {}]   ;;  %s2313_s8 = inlined_call_operand.vmem [shape: bf16[128,128], index: 8, kind: input, shape index: {}]   ;;  %s2314_s7 = inlined_call_operand.vmem [shape: f32[1,128], index: 7, kind: input, shape index: {}]   ;;  %s2315_s10 = inlined_call_operand.vmem [shape: bf16[256,128], index: 10, kind: input, shape index: {}]   ;;  %s2316_s9 = inlined_call_operand.vmem [shape: f32[1,128], index: 9, kind: input, shape index: {}]   ;;  %s2317_s12 = inlined_call_operand.vmem [shape: bf16[128,128], index: 12, kind: input, shape index: {}]   ;;  %s2318_s11 = inlined_call_operand.vmem [shape: f32[1,128], index: 11, kind: input, shape index: {}]   ;;  %s2319_s13 = inlined_call_operand.vmem [shape: f32[1,128], index: 13, kind: input, shape index: {}]   ;;  %s2320_s14 = inlined_call_operand.vmem [shape: f32[16,128], index: 14, kind: output, shape index: {}]  }
   0x1   :  { %1708 = vset.pattern.permute.xlu1 %v1766_v0  ;;  %1707 = vset.pattern.permute.xlu0 %v1766_v0  ;;  %v50_v1 = vld [vmem:[%s2306_s1 + $0x10] sm:$0xff]  ;;  %v48_v2 = vld [vmem:[%s2306_s1] sm:$0xff]  ;;  %v51_v3 = vld [vmem:[%s2306_s1 + $0x18] sm:$0xff] }
   0x2   :  { %v66_v4 = vadd.f32 1.0, %v50_v1  ;;  %v64_v5 = vadd.f32 1.0, %v48_v2  ;;  %v49_v6 = vld [vmem:[%s2306_s1 + $0x8] sm:$0xff]  ;;  %v67_v7 = vadd.f32 1.0, %v51_v3  ;;  %v52_v10 = vld [vmem:[%s2306_s1 + $0x20] sm:$0xff]  ;;  %v55_v12 = vld [vmem:[%s2306_s1 + $0x38] sm:$0xff] }
   0x3   :  { %v65_v8 = vadd.f32 1.0, %v49_v6  ;;  %v53_v9 = vld [vmem:[%s2306_s1 + $0x28] sm:$0xff]  ;;  %v1709_v13 = vld [vmem:[%s2307_s4] sm:$0xff]   ;;  %v68_v14 = vadd.f32 1.0, %v52_v10  ;;  %v54_v16 = vld [vmem:[%s2306_s1 + $0x30] sm:$0xff]  ;;  %v71_v19 = vadd.f32 1.0, %v55_v12 }
   0x4   :  { %93 = vperm.xlu1 %1708, %v66_v4   ;;  %83 = vperm.xlu0 %1707, %v64_v5   ;;  %v69_v11 = vadd.f32 1.0, %v53_v9  ;;  %v1710_v15 = vld [vmem:[%s2307_s4 + $0x8] sm:$0xff]   ;;  %v1711_v18 = vld [vmem:[%s2307_s4 + $0x10] sm:$0xff]   ;;  %v70_v20 = vadd.f32 1.0, %v54_v16  ;;  %v56_v21 = vld [vmem:[%s2306_s1 + $0x40] sm:$0xff] }
   0x5   :  { %1516 = vmatprep.subr.bf16.mxu0 %v1709_v13  ;;  %v57_v17 = vld [vmem:[%s2306_s1 + $0x48] sm:$0xff]  ;;  %v1712_v22 = vld [vmem:[%s2307_s4 + $0x18] sm:$0xff]   ;;  %v72_v24 = vadd.f32 1.0, %v56_v21  ;;  %v58_v26 = vld [vmem:[%s2306_s1 + $0x50] sm:$0xff] }
   0x6   :  { %1517 = vmatpush3.bf16.msra.mxu0 %v1709_v13  ;;  %v73_v23 = vadd.f32 1.0, %v57_v17  ;;  %v59_v25 = vld [vmem:[%s2306_s1 + $0x58] sm:$0xff]  ;;  %v1713_v27 = vld [vmem:[%s2307_s4 + $0x20] sm:$0xff]   ;;  %v74_v29 = vadd.f32 1.0, %v58_v26  ;;  %v61_v30 = vld [vmem:[%s2306_s1 + $0x68] sm:$0xff] }
   0x7   :  { %1518 = vmatprep.subr.bf16.mxu0 %v1710_v15  ;;  %v75_v28 = vadd.f32 1.0, %v59_v25  ;;  %v60_v31 = vld [vmem:[%s2306_s1 + $0x60] sm:$0xff]  ;;  %v1714_v32 = vld [vmem:[%s2307_s4 + $0x28] sm:$0xff]   ;;  %v77_v33 = vadd.f32 1.0, %v61_v30  ;;  %v63_v35 = vld [vmem:[%s2306_s1 + $0x78] sm:$0xff] }
   0x8   :  { %98 = vperm.xlu1 %1708, %v67_v7   ;;  %88 = vperm.xlu0 %1707, %v65_v8   ;;  %v76_v34 = vadd.f32 1.0, %v60_v31  ;;  %v62_v36 = vld [vmem:[%s2306_s1 + $0x70] sm:$0xff]  ;;  %v79_v38 = vadd.f32 1.0, %v63_v35  ;;  %v1716_v40 = vld [vmem:[%s2307_s4 + $0x38] sm:$0xff]   ;;  %v1919_v41 = vld [vmem:[%s2308_s2] ss:$0 sm:$0xff] }
   0x9   :  { %v1715_v37 = vld [vmem:[%s2307_s4 + $0x30] sm:$0xff]   ;;  %v78_v39 = vadd.f32 1.0, %v62_v36  ;;  %v1924_v44 = vld [vmem:[%s2309_s3] ss:$0 sm:$0xff] }
   0xa   :  { %1519 = vmatpush3.bf16.msra.mxu0 %v1710_v15 }
   0xb   :  { %1520 = vmatprep.subr.bf16.mxu0 %v1711_v18 }
   0xc   :  { %108 = vperm.xlu1 %1708, %v69_v11   ;;  %103 = vperm.xlu0 %1707, %v68_v14  }
   0xe   :  { %1521 = vmatpush3.bf16.msra.mxu0 %v1711_v18 }
   0xf   :  { %1522 = vmatprep.subr.bf16.mxu0 %v1712_v22 }
  0x10   :  { %118 = vperm.xlu1 %1708, %v71_v19   ;;  %113 = vperm.xlu0 %1707, %v70_v20  }
  0x12   :  { %1523 = vmatpush3.bf16.msra.mxu0 %v1712_v22 }
  0x13   :  { %1524 = vmatprep.subr.bf16.mxu0 %v1713_v27 }
  0x14   :  { %128 = vperm.xlu1 %1708, %v73_v23   ;;  %123 = vperm.xlu0 %1707, %v72_v24  }
  0x16   :  { %1525 = vmatpush3.bf16.msra.mxu0 %v1713_v27 }
  0x17   :  { %1526 = vmatprep.subr.bf16.mxu0 %v1714_v32 }
  0x18   :  { %138 = vperm.xlu1 %1708, %v75_v28   ;;  %133 = vperm.xlu0 %1707, %v74_v29  }
  0x1a   :  { %1527 = vmatpush3.bf16.msra.mxu0 %v1714_v32 }
  0x1b   :  { %1528 = vmatprep.subr.bf16.mxu0 %v1715_v37 }
  0x1c   :  { %148 = vperm.xlu1 %1708, %v77_v33   ;;  %143 = vperm.xlu0 %1707, %v76_v34  }
  0x1e   :  { %1529 = vmatpush3.bf16.msra.mxu0 %v1715_v37 }
  0x1f   :  { %1530 = vmatprep.subr.bf16.mxu0 %v1716_v40 }
  0x20   :  { %158 = vperm.xlu1 %1708, %v79_v38   ;;  %153 = vperm.xlu0 %1707, %v78_v39  }
  0x22   :  { %1531 = vmatpush3.bf16.msra.mxu0 %v1716_v40 }
  0x83   :  { %v94_v42 = vpop.permute.xlu1 %93  ;;  %v84_v43 = vpop.permute.xlu0 %83 }
  0x84   :  { %v169_v45 = vmul.f32 %v1919_v41, %v94_v42  ;;  %v167_v46 = vmul.f32 %v1919_v41, %v84_v43 }
  0x86   :  { %v192_v47 = vadd.f32 %v1924_v44, %v169_v45  ;;  %v190_v50 = vadd.f32 %v1924_v44, %v167_v46 }
  0x87   :  { %v99_v48 = vpop.permute.xlu1 %98  ;;  %v89_v49 = vpop.permute.xlu0 %88 }
  0x88   :  { %v170_v51 = vmul.f32 %v1919_v41, %v99_v48  ;;  %v168_v52 = vmul.f32 %v1919_v41, %v89_v49  ;;  %v208_v55 = vmax.f32 %v192_v47, 0.0  ;;  %v206_v58 = vmax.f32 %v190_v50, 0.0 }
  0x8a   :  { %v193_v53 = vadd.f32 %v1924_v44, %v170_v51  ;;  %v191_v54 = vadd.f32 %v1924_v44, %v168_v52 }
  0x8b   :  { %v109_v56 = vpop.permute.xlu1 %108  ;;  %v104_v57 = vpop.permute.xlu0 %103 }
  0x8c   :  { %v209_v59 = vmax.f32 %v193_v53, 0.0  ;;  %v172_v60 = vmul.f32 %v1919_v41, %v109_v56  ;;  %v171_v61 = vmul.f32 %v1919_v41, %v104_v57  ;;  %v207_v62 = vmax.f32 %v191_v54, 0.0  ;;  %v1727_v54 = vld [vmem:[%s2311_s6 + $0x10] sm:$0xff]   ;;  %v1729_v56 = vld [vmem:[%s2311_s6 + $0x20] sm:$0xff]  }
  0x8d   :  { %v1767_v53 = vmov 0.0   ;;  %v1349_v57 = vld [vmem:[%s2312_s5] ss:$0 sm:$0xff] }
  0x8e   :  { %v195_v63 = vadd.f32 %v1924_v44, %v172_v60  ;;  %v194_v0 = vadd.f32 %v1924_v44, %v171_v61  ;;  %v222_v1 = vpack.c.bf16 %v207_v62, %v206_v58  ;;  %v223_v2 = vpack.c.bf16 %v209_v59, %v208_v55  ;;  %1548 = vmatprep.subr.bf16.mxu1 %v1767_v53  ;;  %v1728_v55 = vld [vmem:[%s2311_s6 + $0x18] sm:$0xff]  }
  0x8f   :  { %v119_v3 = vpop.permute.xlu1 %118  ;;  %v114_v4 = vpop.permute.xlu0 %113  ;;  %1564 = vmatprep.mubr.msk.bf16.mxu1 %vm1768_vm0, %v1767_v53 }
  0x90   :  { %v211_v5 = vmax.f32 %v195_v63, 0.0  ;;  %v210_v6 = vmax.f32 %v194_v0, 0.0  ;;  %v174_v7 = vmul.f32 %v1919_v41, %v119_v3  ;;  %v173_v8 = vmul.f32 %v1919_v41, %v114_v4  ;;  %1532 = vmatprep.mubr.bf16.mxu0 %v222_v1 }
  0x91   :  { %1533 = vmatmul.mubr.bf16.vlgmr.msra.gmra.mrb[0].mxu0 %v223_v2 }
  0x92   :  { %v197_v9 = vadd.f32 %v1924_v44, %v174_v7  ;;  %v196_v10 = vadd.f32 %v1924_v44, %v173_v8  ;;  %v224_v11 = vpack.c.bf16 %v211_v5, %v210_v6 }
  0x93   :  { %v129_v12 = vpop.permute.xlu1 %128  ;;  %v124_v13 = vpop.permute.xlu0 %123 }
  0x94   :  { %v213_v14 = vmax.f32 %v197_v9, 0.0  ;;  %v212_v15 = vmax.f32 %v196_v10, 0.0  ;;  %v176_v16 = vmul.f32 %v1919_v41, %v129_v12  ;;  %v175_v17 = vmul.f32 %v1919_v41, %v124_v13  ;;  %1536 = vmatprep.mubr.bf16.mxu0 %v224_v11 }
  0x96   :  { %v199_v18 = vadd.f32 %v1924_v44, %v176_v16  ;;  %v198_v19 = vadd.f32 %v1924_v44, %v175_v17  ;;  %v225_v20 = vpack.c.bf16 %v213_v14, %v212_v15 }
  0x97   :  { %v139_v21 = vpop.permute.xlu1 %138  ;;  %v134_v22 = vpop.permute.xlu0 %133 }
  0x98   :  { %v215_v23 = vmax.f32 %v199_v18, 0.0  ;;  %v214_v24 = vmax.f32 %v198_v19, 0.0  ;;  %v178_v25 = vmul.f32 %v1919_v41, %v139_v21  ;;  %v177_v26 = vmul.f32 %v1919_v41, %v134_v22 }
  0x99   :  { %1537 = vmatmul.mubr.bf16.gmra.mrb[4].mxu0 %v225_v20 }
  0x9a   :  { %v201_v27 = vadd.f32 %v1924_v44, %v178_v25  ;;  %v200_v28 = vadd.f32 %v1924_v44, %v177_v26  ;;  %v226_v29 = vpack.c.bf16 %v215_v23, %v214_v24 }
  0x9b   :  { %v149_v30 = vpop.permute.xlu1 %148  ;;  %v144_v31 = vpop.permute.xlu0 %143 }
  0x9c   :  { %v217_v32 = vmax.f32 %v201_v27, 0.0  ;;  %v216_v33 = vmax.f32 %v200_v28, 0.0  ;;  %v180_v34 = vmul.f32 %v1919_v41, %v149_v30  ;;  %v179_v35 = vmul.f32 %v1919_v41, %v144_v31  ;;  %1540 = vmatprep.mubr.bf16.mxu0 %v226_v29 }
  0x9e   :  { %v203_v36 = vadd.f32 %v1924_v44, %v180_v34  ;;  %v202_v37 = vadd.f32 %v1924_v44, %v179_v35  ;;  %v227_v38 = vpack.c.bf16 %v217_v32, %v216_v33 }
  0x9f   :  { %v159_v39 = vpop.permute.xlu1 %158  ;;  %v154_v40 = vpop.permute.xlu0 %153 }
  0xa0   :  { %v219_v42 = vmax.f32 %v203_v36, 0.0  ;;  %v218_v43 = vmax.f32 %v202_v37, 0.0  ;;  %v182_v45 = vmul.f32 %v1919_v41, %v159_v39  ;;  %v181_v46 = vmul.f32 %v1919_v41, %v154_v40  ;;  %v1725_v41 = vld [vmem:[%s2311_s6] sm:$0xff]  }
  0xa1   :  { %1541 = vmatmul.mubr.bf16.gmra.mrb[8].mxu0 %v227_v38  ;;  %1600 = vmatprep.subr.bf16.mxu0 %v1725_v41 }
  0xa2   :  { %v205_v47 = vadd.f32 %v1924_v44, %v182_v45  ;;  %v204_v48 = vadd.f32 %v1924_v44, %v181_v46  ;;  %v228_v49 = vpack.c.bf16 %v219_v42, %v218_v43  ;;  %v1726_v44 = vld [vmem:[%s2311_s6 + $0x8] sm:$0xff]   ;;  %1601 = vmatpush3.bf16.msra.mxu0 %v1725_v41 }
  0xa3   :  { %1602 = vmatprep.subr.bf16.mxu0 %v1726_v44  ;;  %v1718_v41 = vld [vmem:[%s2310_s0 + $0x8] sm:$0xff]  }
  0xa4   :  { %v221_v50 = vmax.f32 %v205_v47, 0.0  ;;  %v220_v51 = vmax.f32 %v204_v48, 0.0  ;;  %1544 = vmatprep.mubr.bf16.mxu0 %v228_v49 }
  0xa6   :  { %v229_v52 = vpack.c.bf16 %v221_v50, %v220_v51  ;;  %1603 = vmatpush3.bf16.msra.mxu0 %v1726_v44  ;;  %v1719_v44 = vld [vmem:[%s2310_s0 + $0x10] sm:$0xff]  }
  0xa7   :  { %1604 = vmatprep.subr.bf16.mxu0 %v1727_v54 }
  0xa9   :  { %1545 = vmatmul.mubr.bf16.gmra.mrb[12].mxu0 %v229_v52  ;;  %v1717_v52 = vld [vmem:[%s2310_s0] sm:$0xff]  }
  0xaa   :  { %1605 = vmatpush3.bf16.msra.mxu0 %v1727_v54  ;;  %v1720_v54 = vld [vmem:[%s2310_s0 + $0x18] sm:$0xff]  }
  0xab   :  { %1606 = vmatprep.subr.bf16.mxu0 %v1728_v55 }
  0xae   :  { %1607 = vmatpush3.bf16.msra.mxu0 %v1728_v55  ;;  %v1721_v55 = vld [vmem:[%s2310_s0 + $0x20] sm:$0xff]  }
  0xaf   :  { %1608 = vmatprep.subr.bf16.mxu0 %v1729_v56 }
  0xb2   :  { %1609 = vmatpush3.bf16.msra.mxu0 %v1729_v56  ;;  %v1722_v56 = vld [vmem:[%s2310_s0 + $0x28] sm:$0xff]  }
 0x164   :  { %v1534_v58 = vpop.f32.mrb[0].mxu0 }
 0x165   :  { %v335_v59 = vpop.f32.mrb[1].mxu0  ;;  %v1985_v1 = vadd.f32 %v1534_v58, %v1349_v57  ;;  %v1724_v58 = vld [vmem:[%s2310_s0 + $0x38] sm:$0xff]  }
 0x166   :  { %v1979_v60 = vadd.f32 %v1349_v57, %v335_v59  ;;  %v1535_v61 = vpop.f32.mrb[2].mxu0  ;;  %v1730_v59 = vld [vmem:[%s2311_s6 + $0x28] sm:$0xff]  }
 0x167   :  { %v338_v62 = vpop.f32.mrb[3].mxu0  ;;  %v1981_v63 = vadd.f32 %v1535_v61, %v1349_v57  ;;  %v400_v8 = vmax.f32 %v1985_v1, 0.0  ;;  %1610 = vmatprep.subr.bf16.mxu0 %v1730_v59  ;;  %v1731_v61 = vld [vmem:[%s2311_s6 + $0x30] sm:$0xff]  }
 0x168   :  { %v1983_v0 = vadd.f32 %v1349_v57, %v338_v62  ;;  %v398_v2 = vmax.f32 %v1979_v60, 0.0  ;;  %1611 = vmatpush3.bf16.msra.mxu0 %v1730_v59  ;;  %v1732_v62 = vld [vmem:[%s2311_s6 + $0x38] sm:$0xff]   ;;  %v1734_v60 = vld [vmem:[%s2313_s8 + $0x8] sm:$0xff]  }
 0x169   :  { %v401_v4 = vmax.f32 %v1981_v63, 0.0  ;;  %1612 = vmatprep.subr.bf16.mxu0 %v1731_v61 }
 0x16a   :  { %v399_v3 = vmax.f32 %v1983_v0, 0.0 }
 0x16b   :  { %v415_v12 = vpack.c.bf16 %v401_v4, %v400_v8 }
 0x16c   :  { %v1538_v5 = vpop.f32.mrb[4].mxu0  ;;  %v414_v6 = vpack.c.bf16 %v399_v3, %v398_v2  ;;  %1613 = vmatpush3.bf16.msra.mxu0 %v1731_v61 }
 0x16d   :  { %v351_v7 = vpop.f32.mrb[5].mxu0  ;;  %v2006_v15 = vadd.f32 %v1538_v5, %v1349_v57  ;;  %1614 = vmatprep.subr.bf16.mxu0 %v1732_v62  ;;  %v1733_v5 = vld [vmem:[%s2313_s8] sm:$0xff]  }
 0x16e   :  { %v1995_v9 = vadd.f32 %v1349_v57, %v351_v7  ;;  %v1539_v10 = vpop.f32.mrb[6].mxu0  ;;  %1549 = vmatpush3.bf16.msra.mxu1 %v414_v6 }
 0x16f   :  { %v354_v11 = vpop.f32.mrb[7].mxu0  ;;  %1550 = vmatprep.subr.bf16.mxu1 %v1767_v53  ;;  %v2002_v13 = vadd.f32 %v1539_v10, %v1349_v57  ;;  %v404_v22 = vmax.f32 %v2006_v15, 0.0 }
 0x170   :  { %v2004_v14 = vadd.f32 %v1349_v57, %v354_v11  ;;  %v402_v16 = vmax.f32 %v1995_v9, 0.0  ;;  %1615 = vmatpush3.bf16.msra.mxu0 %v1732_v62  ;;  %v1737_v9 = vld [vmem:[%s2313_s8 + $0x20] sm:$0xff]  }
 0x171   :  { %v405_v18 = vmax.f32 %v2002_v13, 0.0  ;;  %1632 = vmatprep.subr.bf16.mxu0 %v1733_v5 }
 0x172   :  { %v403_v17 = vmax.f32 %v2004_v14, 0.0  ;;  %1551 = vmatpush3.bf16.msra.mxu1 %v415_v12 }
 0x173   :  { %1552 = vmatprep.subr.bf16.mxu1 %v1767_v53  ;;  %v417_v26 = vpack.c.bf16 %v405_v18, %v404_v22 }
 0x174   :  { %v416_v19 = vpack.c.bf16 %v403_v17, %v402_v16  ;;  %v1542_v20 = vpop.f32.mrb[8].mxu0 }
 0x175   :  { %v367_v21 = vpop.f32.mrb[9].mxu0  ;;  %v2028_v29 = vadd.f32 %v1542_v20, %v1349_v57 }
 0x176   :  { %v2017_v23 = vadd.f32 %v1349_v57, %v367_v21  ;;  %v1543_v24 = vpop.f32.mrb[10].mxu0  ;;  %1553 = vmatpush3.bf16.msra.mxu1 %v416_v19 }
 0x177   :  { %v370_v25 = vpop.f32.mrb[11].mxu0  ;;  %1554 = vmatprep.subr.bf16.mxu1 %v1767_v53  ;;  %v2024_v27 = vadd.f32 %v1543_v24, %v1349_v57  ;;  %v408_v36 = vmax.f32 %v2028_v29, 0.0 }
 0x178   :  { %v2026_v28 = vadd.f32 %v1349_v57, %v370_v25  ;;  %v406_v30 = vmax.f32 %v2017_v23, 0.0 }
 0x179   :  { %v409_v32 = vmax.f32 %v2024_v27, 0.0 }
 0x17a   :  { %v407_v31 = vmax.f32 %v2026_v28, 0.0  ;;  %1555 = vmatpush3.bf16.msra.mxu1 %v417_v26 }
 0x17b   :  { %1556 = vmatprep.subr.bf16.mxu1 %v1767_v53  ;;  %v419_v40 = vpack.c.bf16 %v409_v32, %v408_v36 }
 0x17c   :  { %v418_v33 = vpack.c.bf16 %v407_v31, %v406_v30  ;;  %v1546_v34 = vpop.f32.mrb[12].mxu0 }
 0x17d   :  { %v383_v35 = vpop.f32.mrb[13].mxu0  ;;  %v2050_v45 = vadd.f32 %v1546_v34, %v1349_v57 }
 0x17e   :  { %v2039_v37 = vadd.f32 %v1349_v57, %v383_v35  ;;  %v1547_v38 = vpop.f32.mrb[14].mxu0  ;;  %1557 = vmatpush3.bf16.msra.mxu1 %v418_v33 }
 0x17f   :  { %v386_v39 = vpop.f32.mrb[15].mxu0  ;;  %1558 = vmatprep.subr.bf16.mxu1 %v1767_v53  ;;  %v2046_v42 = vadd.f32 %v1547_v38, %v1349_v57  ;;  %v412_v50 = vmax.f32 %v2050_v45, 0.0 }
 0x180   :  { %v2048_v43 = vadd.f32 %v1349_v57, %v386_v39  ;;  %v410_v46 = vmax.f32 %v2039_v37, 0.0  ;;  %v1723_v57 = vld [vmem:[%s2310_s0 + $0x30] sm:$0xff]   ;;  %v1736_v39 = vld [vmem:[%s2313_s8 + $0x18] sm:$0xff]  }
 0x181   :  { %v413_v48 = vmax.f32 %v2046_v42, 0.0  ;;  %v1739_v37 = vld [vmem:[%s2313_s8 + $0x30] sm:$0xff]   ;;  %v1367_v42 = vld [vmem:[%s2314_s7] ss:$0 sm:$0xff] }
 0x182   :  { %v411_v47 = vmax.f32 %v2048_v43, 0.0  ;;  %1559 = vmatpush3.bf16.msra.mxu1 %v419_v40  ;;  %v1740_v43 = vld [vmem:[%s2313_s8 + $0x38] sm:$0xff]  }
 0x183   :  { %1560 = vmatprep.subr.bf16.mxu1 %v1767_v53  ;;  %v421_v51 = vpack.c.bf16 %v413_v48, %v412_v50 }
 0x184   :  { %v420_v49 = vpack.c.bf16 %v411_v47, %v410_v46 }
 0x186   :  { %1561 = vmatpush3.bf16.msra.mxu1 %v420_v49 }
 0x187   :  { %1562 = vmatprep.subr.bf16.mxu1 %v1767_v53 }
 0x18a   :  { %1563 = vmatpush3.bf16.msra.mxu1 %v421_v51 }
 0x18b   :  { %1664 = vmatprep.subr.bf16.mxu1 %v1767_v53 }
 0x18d   :  { %1565 = vmatmul.mubr.bf16.vlgmr.msra.gmra.mrb[0].mxu1 %v1717_v52 }
 0x18e   :  { %1568 = vmatprep.mubr.msk.bf16.mxu1 %vm1768_vm0, %v1767_v53 }
 0x195   :  { %1569 = vmatmul.mubr.bf16.gmra.mrb[4].mxu1 %v1718_v41  ;;  %v1738_v41 = vld [vmem:[%s2313_s8 + $0x28] sm:$0xff]  }
 0x196   :  { %1572 = vmatprep.mubr.msk.bf16.mxu1 %vm1768_vm0, %v1767_v53 }
 0x19d   :  { %1573 = vmatmul.mubr.bf16.gmra.mrb[8].mxu1 %v1719_v44 }
 0x19e   :  { %1576 = vmatprep.mubr.msk.bf16.mxu1 %vm1768_vm0, %v1767_v53 }
 0x1a5   :  { %1577 = vmatmul.mubr.bf16.gmra.mrb[12].mxu1 %v1720_v54 }
 0x1a6   :  { %1580 = vmatprep.mubr.msk.bf16.mxu1 %vm1768_vm0, %v1767_v53 }
 0x1ad   :  { %1581 = vmatmul.mubr.bf16.gmra.mrb[16].mxu1 %v1721_v55 }
 0x1ae   :  { %1584 = vmatprep.mubr.msk.bf16.mxu1 %vm1768_vm0, %v1767_v53 }
 0x1b5   :  { %1585 = vmatmul.mubr.bf16.gmra.mrb[20].mxu1 %v1722_v56 }
 0x1b6   :  { %1588 = vmatprep.mubr.msk.bf16.mxu1 %vm1768_vm0, %v1767_v53 }
 0x1bd   :  { %1589 = vmatmul.mubr.bf16.gmra.mrb[24].mxu1 %v1723_v57 }
 0x1be   :  { %1592 = vmatprep.mubr.msk.bf16.mxu1 %vm1768_vm0, %v1767_v53 }
 0x1c5   :  { %1593 = vmatmul.mubr.bf16.gmra.mrb[28].mxu1 %v1724_v58 }
 0x1c6   :  { %1596 = vmatprep.mubr.msk.bf16.mxu1 %vm1768_vm0, %v1767_v53 }
 0x260   :  { %v528_v6 = vpop.f32.mrb[0].mxu1 }
 0x261   :  { %v1566_v7 = vpop.f32.mrb[1].mxu1  ;;  %v599_v11 = vadd.f32 %v528_v6, %v398_v2 }
 0x262   :  { %v531_v10 = vpop.f32.mrb[2].mxu1 }
 0x263   :  { %v600_v12 = vadd.f32 %v531_v10, %v399_v3  ;;  %v1567_v19 = vpop.f32.mrb[3].mxu1  ;;  %v1735_v3 = vld [vmem:[%s2313_s8 + $0x10] sm:$0xff]  }
 0x265   :  { %v615_v20 = vpack.c.bf16 %v600_v12, %v599_v11 }
 0x267   :  { %1616 = vmatprep.mubr.bf16.mxu0 %v615_v20 }
 0x268   :  { %v536_v21 = vpop.f32.mrb[4].mxu1 }
 0x269   :  { %v1570_v24 = vpop.f32.mrb[5].mxu1  ;;  %v601_v26 = vadd.f32 %v536_v21, %v400_v8 }
 0x26a   :  { %v539_v25 = vpop.f32.mrb[6].mxu1 }
 0x26b   :  { %v602_v33 = vadd.f32 %v539_v25, %v401_v4  ;;  %v1571_v34 = vpop.f32.mrb[7].mxu1 }
 0x26d   :  { %v616_v35 = vpack.c.bf16 %v602_v33, %v601_v26 }
 0x26f   :  { %1617 = vmatmul.mubr.bf16.vlgmr.msra.gmra.mrb[16].mxu0 %v616_v35 }
 0x270   :  { %v544_v0 = vpop.f32.mrb[8].mxu1  ;;  %1633 = vmatpush3.bf16.msra.mxu0 %v1733_v5 }
 0x271   :  { %v1574_v2 = vpop.f32.mrb[9].mxu1  ;;  %1634 = vmatprep.subr.bf16.mxu0 %v1734_v60  ;;  %v603_v63 = vadd.f32 %v544_v0, %v402_v16 }
 0x272   :  { %v547_v1 = vpop.f32.mrb[10].mxu1 }
 0x273   :  { %v604_v4 = vadd.f32 %v547_v1, %v403_v17  ;;  %v1575_v8 = vpop.f32.mrb[11].mxu1 }
 0x274   :  { %1635 = vmatpush3.bf16.msra.mxu0 %v1734_v60 }
 0x275   :  { %v617_v38 = vpack.c.bf16 %v604_v4, %v603_v63  ;;  %1636 = vmatprep.subr.bf16.mxu0 %v1735_v3 }
 0x277   :  { %1620 = vmatprep.mubr.bf16.mxu0 %v617_v38 }
 0x278   :  { %v552_v40 = vpop.f32.mrb[12].mxu1  ;;  %1637 = vmatpush3.bf16.msra.mxu0 %v1735_v3 }
 0x279   :  { %v1578_v49 = vpop.f32.mrb[13].mxu1  ;;  %1638 = vmatprep.subr.bf16.mxu0 %v1736_v39  ;;  %v605_v14 = vadd.f32 %v552_v40, %v404_v22 }
 0x27a   :  { %v555_v16 = vpop.f32.mrb[14].mxu1 }
 0x27b   :  { %v606_v17 = vadd.f32 %v555_v16, %v405_v18  ;;  %v1579_v51 = vpop.f32.mrb[15].mxu1 }
 0x27c   :  { %1639 = vmatpush3.bf16.msra.mxu0 %v1736_v39 }
 0x27d   :  { %v618_v52 = vpack.c.bf16 %v606_v17, %v605_v14  ;;  %1640 = vmatprep.subr.bf16.mxu0 %v1737_v9 }
 0x27f   :  { %1621 = vmatmul.mubr.bf16.gmra.mrb[20].mxu0 %v618_v52 }
 0x280   :  { %v560_v44 = vpop.f32.mrb[16].mxu1  ;;  %1641 = vmatpush3.bf16.msra.mxu0 %v1737_v9 }
 0x281   :  { %v1582_v54 = vpop.f32.mrb[17].mxu1  ;;  %1642 = vmatprep.subr.bf16.mxu0 %v1738_v41  ;;  %v607_v15 = vadd.f32 %v560_v44, %v406_v30 }
 0x282   :  { %v563_v55 = vpop.f32.mrb[18].mxu1 }
 0x283   :  { %v608_v13 = vadd.f32 %v563_v55, %v407_v31  ;;  %v1583_v18 = vpop.f32.mrb[19].mxu1 }
 0x284   :  { %1643 = vmatpush3.bf16.msra.mxu0 %v1738_v41 }
 0x285   :  { %v619_v22 = vpack.c.bf16 %v608_v13, %v607_v15  ;;  %1644 = vmatprep.subr.bf16.mxu0 %v1739_v37 }
 0x287   :  { %1624 = vmatprep.mubr.bf16.mxu0 %v619_v22 }
 0x288   :  { %v568_v56 = vpop.f32.mrb[20].mxu1  ;;  %1645 = vmatpush3.bf16.msra.mxu0 %v1739_v37  ;;  %v1745_v37 = vld [vmem:[%s2315_s10 + $0x8] sm:$0xff]  }
 0x289   :  { %v1586_v57 = vpop.f32.mrb[21].mxu1  ;;  %v609_v59 = vadd.f32 %v568_v56, %v408_v36  ;;  %1646 = vmatprep.subr.bf16.mxu0 %v1740_v43 }
 0x28a   :  { %v571_v58 = vpop.f32.mrb[22].mxu1 }
 0x28b   :  { %v610_v61 = vadd.f32 %v571_v58, %v409_v32  ;;  %v1587_v62 = vpop.f32.mrb[23].mxu1 }
 0x28c   :  { %1647 = vmatpush3.bf16.msra.mxu0 %v1740_v43  ;;  %v1746_v43 = vld [vmem:[%s2315_s10 + $0x50] sm:$0xff]  }
 0x28d   :  { %v620_v5 = vpack.c.bf16 %v610_v61, %v609_v59 }
 0x28f   :  { %1625 = vmatmul.mubr.bf16.gmra.mrb[24].mxu0 %v620_v5 }
 0x290   :  { %v576_v23 = vpop.f32.mrb[24].mxu1 }
 0x291   :  { %v1590_v30 = vpop.f32.mrb[25].mxu1  ;;  %v611_v31 = vadd.f32 %v576_v23, %v410_v46 }
 0x292   :  { %v579_v28 = vpop.f32.mrb[26].mxu1 }
 0x293   :  { %v612_v6 = vadd.f32 %v579_v28, %v411_v47  ;;  %v1591_v7 = vpop.f32.mrb[27].mxu1 }
 0x295   :  { %v621_v10 = vpack.c.bf16 %v612_v6, %v611_v31 }
 0x297   :  { %1628 = vmatprep.mubr.bf16.mxu0 %v621_v10 }
 0x298   :  { %v584_v29 = vpop.f32.mrb[28].mxu1 }
 0x299   :  { %v1594_v36 = vpop.f32.mrb[29].mxu1  ;;  %v613_v27 = vadd.f32 %v584_v29, %v412_v50 }
 0x29a   :  { %v587_v11 = vpop.f32.mrb[30].mxu1 }
 0x29b   :  { %v614_v32 = vadd.f32 %v587_v11, %v413_v48  ;;  %v1595_v12 = vpop.f32.mrb[31].mxu1 }
 0x29c   :  { %v1743_v12 = vld [vmem:[%s2315_s10] sm:$0xff]  }
 0x29d   :  { %v622_v19 = vpack.c.bf16 %v614_v32, %v613_v27  ;;  %v2178_v27 = vld [vmem:[%s2310_s0 + $0x40] sm:$0xff]  }
 0x29e   :  { %1597 = vmatmul.mubr.bf16.gmra.mrb[32].mxu1 %v2178_v27  ;;  %v1742_v32 = vld [vmem:[%s2315_s10 + $0x40] sm:$0xff]  }
 0x29f   :  { %1629 = vmatmul.mubr.bf16.gmra.mrb[28].mxu0 %v622_v19  ;;  %1680 = vmatprep.mubr.msk.bf16.mxu1 %vm1768_vm0, %v1767_v53  ;;  %v1744_v19 = vld [vmem:[%s2315_s10 + $0x48] sm:$0xff]  }
 0x2a0   :  { %1485 = vmatprep.subr.bf16.mxu0 %v1742_v32 }
 0x342   :  { %v1618_v45 = vpop.f32.mrb[16].mxu0 }
 0x343   :  { %v737_v46 = vadd.f32 %v1618_v45, %v1367_v42  ;;  %v728_v47 = vpop.f32.mrb[17].mxu0  ;;  %v1748_v45 = vld [vmem:[%s2315_s10 + $0x58] sm:$0xff]  }
 0x344   :  { %v729_v48 = vadd.f32 %v1367_v42, %v728_v47  ;;  %v1619_v50 = vpop.f32.mrb[18].mxu0  ;;  %v1750_v47 = vld [vmem:[%s2315_s10 + $0x60] sm:$0xff]  }
 0x345   :  { %v740_v20 = vadd.f32 %v1619_v50, %v1367_v42  ;;  %v731_v21 = vpop.f32.mrb[19].mxu0  ;;  %v793_v25 = vmax.f32 %v737_v46, 0.0  ;;  %v1749_v46 = vld [vmem:[%s2315_s10 + $0x18] sm:$0xff]   ;;  %v1752_v50 = vld [vmem:[%s2315_s10 + $0x68] sm:$0xff]  }
 0x346   :  { %v732_v24 = vadd.f32 %v1367_v42, %v731_v21  ;;  %v791_v33 = vmax.f32 %v729_v48, 0.0  ;;  %v1751_v48 = vld [vmem:[%s2315_s10 + $0x20] sm:$0xff]  }
 0x347   :  { %v794_v26 = vmax.f32 %v740_v20, 0.0  ;;  %v1753_v20 = vld [vmem:[%s2315_s10 + $0x28] sm:$0xff]   ;;  %v2222_v21 = vld [vmem:[%s2316_s9] ss:$0 sm:$0xff] }
 0x348   :  { %v792_v34 = vmax.f32 %v732_v24, 0.0 }
 0x349   :  { %v808_v35 = vpack.c.bf16 %v794_v26, %v793_v25 }
 0x34a   :  { %v807_v60 = vpack.c.bf16 %v792_v34, %v791_v33 }
 0x34c   :  { %1648 = vmatprep.mubr.bf16.mxu0 %v807_v60 }
 0x34d   :  { %1649 = vmatmul.mubr.bf16.vlgmr.msra.gmra.mrb[32].mxu0 %v808_v35 }
 0x34e   :  { %1486 = vmatpush3.bf16.msra.mxu0 %v1743_v12 }
 0x34f   :  { %1487 = vmatprep.subr.bf16.mxu0 %v1744_v19 }
 0x352   :  { %v1622_v0 = vpop.f32.mrb[20].mxu0  ;;  %1488 = vmatpush3.bf16.msra.mxu0 %v1745_v37 }
 0x353   :  { %v753_v2 = vadd.f32 %v1622_v0, %v1367_v42  ;;  %v744_v3 = vpop.f32.mrb[21].mxu0  ;;  %1489 = vmatprep.subr.bf16.mxu0 %v1746_v43 }
 0x354   :  { %v745_v1 = vadd.f32 %v1367_v42, %v744_v3  ;;  %v1623_v63 = vpop.f32.mrb[22].mxu0 }
 0x355   :  { %v756_v4 = vadd.f32 %v1623_v63, %v1367_v42  ;;  %v747_v8 = vpop.f32.mrb[23].mxu0  ;;  %v797_v39 = vmax.f32 %v753_v2, 0.0 }
 0x356   :  { %v748_v38 = vadd.f32 %v1367_v42, %v747_v8  ;;  %v795_v49 = vmax.f32 %v745_v1, 0.0 }
 0x357   :  { %v798_v40 = vmax.f32 %v756_v4, 0.0 }
 0x358   :  { %v796_v9 = vmax.f32 %v748_v38, 0.0  ;;  %v1754_v38 = vld [vmem:[%s2315_s10 + $0x70] sm:$0xff]  }
 0x359   :  { %v810_v16 = vpack.c.bf16 %v798_v40, %v797_v39  ;;  %v1755_v39 = vld [vmem:[%s2315_s10 + $0x30] sm:$0xff]  }
 0x35a   :  { %v809_v14 = vpack.c.bf16 %v796_v9, %v795_v49 }
 0x35c   :  { %1652 = vmatprep.mubr.bf16.mxu0 %v809_v14 }
 0x35d   :  { %1653 = vmatmul.mubr.bf16.gmra.mrb[36].mxu0 %v810_v16 }
 0x362   :  { %v1626_v17 = vpop.f32.mrb[24].mxu0 }
 0x363   :  { %v769_v51 = vadd.f32 %v1626_v17, %v1367_v42  ;;  %v760_v52 = vpop.f32.mrb[25].mxu0 }
 0x364   :  { %v761_v41 = vadd.f32 %v1367_v42, %v760_v52  ;;  %v1627_v44 = vpop.f32.mrb[26].mxu0 }
 0x365   :  { %v772_v54 = vadd.f32 %v1627_v44, %v1367_v42  ;;  %v763_v55 = vpop.f32.mrb[27].mxu0  ;;  %v801_v13 = vmax.f32 %v769_v51, 0.0 }
 0x366   :  { %v764_v15 = vadd.f32 %v1367_v42, %v763_v55  ;;  %v799_v22 = vmax.f32 %v761_v41, 0.0 }
 0x367   :  { %v802_v18 = vmax.f32 %v772_v54, 0.0 }
 0x368   :  { %v800_v56 = vmax.f32 %v764_v15, 0.0 }
 0x369   :  { %v812_v57 = vpack.c.bf16 %v802_v18, %v801_v13 }
 0x36a   :  { %v811_v58 = vpack.c.bf16 %v800_v56, %v799_v22 }
 0x36c   :  { %1656 = vmatprep.mubr.bf16.mxu0 %v811_v58 }
 0x36d   :  { %1657 = vmatmul.mubr.bf16.gmra.mrb[40].mxu0 %v812_v57 }
 0x372   :  { %v1630_v59 = vpop.f32.mrb[28].mxu0 }
 0x373   :  { %v785_v61 = vadd.f32 %v1630_v59, %v1367_v42  ;;  %v776_v62 = vpop.f32.mrb[29].mxu0 }
 0x374   :  { %v777_v5 = vadd.f32 %v1367_v42, %v776_v62  ;;  %v1631_v23 = vpop.f32.mrb[30].mxu0 }
 0x375   :  { %v788_v30 = vadd.f32 %v1631_v23, %v1367_v42  ;;  %v779_v28 = vpop.f32.mrb[31].mxu0  ;;  %v805_v6 = vmax.f32 %v785_v61, 0.0 }
 0x376   :  { %v780_v31 = vadd.f32 %v1367_v42, %v779_v28  ;;  %v803_v10 = vmax.f32 %v777_v5, 0.0  ;;  %v1747_v42 = vld [vmem:[%s2315_s10 + $0x10] sm:$0xff]  }
 0x377   :  { %v806_v7 = vmax.f32 %v788_v30, 0.0  ;;  %1490 = vmatpush3.bf16.msra.mxu0 %v1747_v42 }
 0x378   :  { %v804_v29 = vmax.f32 %v780_v31, 0.0  ;;  %1491 = vmatprep.subr.bf16.mxu0 %v1748_v45 }
 0x379   :  { %v814_v36 = vpack.c.bf16 %v806_v7, %v805_v6 }
 0x37a   :  { %v813_v11 = vpack.c.bf16 %v804_v29, %v803_v10 }
 0x37b   :  { %1492 = vmatpush3.bf16.msra.mxu0 %v1749_v46 }
 0x37c   :  { %1660 = vmatprep.mubr.bf16.mxu0 %v813_v11  ;;  %1493 = vmatprep.subr.bf16.mxu0 %v1750_v47 }
 0x37d   :  { %1661 = vmatmul.mubr.bf16.gmra.mrb[44].mxu0 %v814_v36 }
 0x37f   :  { %1494 = vmatpush3.bf16.msra.mxu0 %v1751_v48  ;;  %v592_v48 = vpop.f32.mrb[32].mxu1 }
 0x380   :  { %1495 = vmatprep.subr.bf16.mxu0 %v1752_v50  ;;  %v1598_v50 = vpop.f32.mrb[33].mxu1 }
 0x383   :  { %1496 = vmatpush3.bf16.msra.mxu0 %v1753_v20  ;;  %v595_v20 = vpop.f32.mrb[34].mxu1 }
 0x384   :  { %1497 = vmatprep.subr.bf16.mxu0 %v1754_v38  ;;  %v1765_v38 = vld [vmem:[%s2317_s12 + $0x38] sm:$0xff]  }
 0x387   :  { %1498 = vmatpush3.bf16.msra.mxu0 %v1755_v39 }
 0x420   :  { %v1650_v24 = vpop.f32.mrb[32].mxu0 }
 0x421   :  { %v929_v25 = vadd.f32 %v1650_v24, %v2222_v21  ;;  %v920_v26 = vpop.f32.mrb[33].mxu0  ;;  %v1599_v24 = vpop.f32.mrb[35].mxu1 }
 0x422   :  { %v921_v33 = vadd.f32 %v2222_v21, %v920_v26  ;;  %v1651_v34 = vpop.f32.mrb[34].mxu0  ;;  %v1757_v26 = vld [vmem:[%s2315_s10 + $0x38] sm:$0xff]  }
 0x423   :  { %v932_v35 = vadd.f32 %v1651_v34, %v2222_v21  ;;  %v923_v60 = vpop.f32.mrb[35].mxu0  ;;  %v985_v2 = vmax.f32 %v929_v25, 0.0  ;;  %v1756_v25 = vld [vmem:[%s2315_s10 + $0x78] sm:$0xff]   ;;  %v1760_v34 = vld [vmem:[%s2317_s12 + $0x10] sm:$0xff]  }
 0x424   :  { %v924_v0 = vadd.f32 %v2222_v21, %v923_v60  ;;  %v983_v1 = vmax.f32 %v921_v33, 0.0  ;;  %1499 = vmatprep.subr.bf16.mxu0 %v1756_v25  ;;  %v1759_v33 = vld [vmem:[%s2317_s12 + $0x8] sm:$0xff]   ;;  %v1762_v60 = vld [vmem:[%s2317_s12 + $0x20] sm:$0xff]  }
 0x425   :  { %v986_v3 = vmax.f32 %v932_v35, 0.0  ;;  %1500 = vmatpush3.bf16.msra.mxu0 %v1757_v26  ;;  %v1761_v35 = vld [vmem:[%s2317_s12 + $0x18] sm:$0xff]  }
 0x426   :  { %v984_v63 = vmax.f32 %v924_v0, 0.0 }
 0x427   :  { %v1000_v4 = vpack.c.bf16 %v986_v3, %v985_v2 }
 0x428   :  { %v999_v8 = vpack.c.bf16 %v984_v63, %v983_v1 }
 0x42a   :  { %1665 = vmatpush3.bf16.msra.mxu1 %v999_v8  ;;  %v1764_v8 = vld [vmem:[%s2317_s12 + $0x30] sm:$0xff]  }
 0x42b   :  { %1666 = vmatprep.subr.bf16.mxu1 %v1767_v53 }
 0x42e   :  { %1667 = vmatpush3.bf16.msra.mxu1 %v1000_v4  ;;  %v1763_v4 = vld [vmem:[%s2317_s12 + $0x28] sm:$0xff]  }
 0x42f   :  { %1668 = vmatprep.subr.bf16.mxu1 %v1767_v53 }
 0x430   :  { %v1654_v40 = vpop.f32.mrb[36].mxu0 }
 0x431   :  { %v945_v49 = vadd.f32 %v1654_v40, %v2222_v21  ;;  %v936_v9 = vpop.f32.mrb[37].mxu0  ;;  %v1385_v40 = vld [vmem:[%s2318_s11] ss:$0 sm:$0xff] }
 0x432   :  { %v937_v16 = vadd.f32 %v2222_v21, %v936_v9  ;;  %v1655_v14 = vpop.f32.mrb[38].mxu0 }
 0x433   :  { %v948_v17 = vadd.f32 %v1655_v14, %v2222_v21  ;;  %v939_v51 = vpop.f32.mrb[39].mxu0  ;;  %v989_v41 = vmax.f32 %v945_v49, 0.0 }
 0x434   :  { %v940_v52 = vadd.f32 %v2222_v21, %v939_v51  ;;  %v987_v54 = vmax.f32 %v937_v16, 0.0 }
 0x435   :  { %v990_v44 = vmax.f32 %v948_v17, 0.0 }
 0x436   :  { %v988_v55 = vmax.f32 %v940_v52, 0.0 }
 0x437   :  { %v1002_v15 = vpack.c.bf16 %v990_v44, %v989_v41 }
 0x438   :  { %v1001_v13 = vpack.c.bf16 %v988_v55, %v987_v54  ;;  %v1402_v54 = vld [vmem:[%s2319_s13] ss:$0 sm:$0xff] }
 0x43a   :  { %1669 = vmatpush3.bf16.msra.mxu1 %v1001_v13 }
 0x43b   :  { %1670 = vmatprep.subr.bf16.mxu1 %v1767_v53 }
 0x43e   :  { %1671 = vmatpush3.bf16.msra.mxu1 %v1002_v15 }
 0x43f   :  { %1672 = vmatprep.subr.bf16.mxu1 %v1767_v53 }
 0x440   :  { %v1658_v18 = vpop.f32.mrb[40].mxu0 }
 0x441   :  { %v961_v22 = vadd.f32 %v1658_v18, %v2222_v21  ;;  %v952_v56 = vpop.f32.mrb[41].mxu0 }
 0x442   :  { %v953_v57 = vadd.f32 %v2222_v21, %v952_v56  ;;  %v1659_v58 = vpop.f32.mrb[42].mxu0 }
 0x443   :  { %v964_v59 = vadd.f32 %v1659_v58, %v2222_v21  ;;  %v955_v61 = vpop.f32.mrb[43].mxu0  ;;  %v993_v5 = vmax.f32 %v961_v22, 0.0 }
 0x444   :  { %v956_v62 = vadd.f32 %v2222_v21, %v955_v61  ;;  %v991_v30 = vmax.f32 %v953_v57, 0.0 }
 0x445   :  { %v994_v23 = vmax.f32 %v964_v59, 0.0 }
 0x446   :  { %v992_v28 = vmax.f32 %v956_v62, 0.0 }
 0x447   :  { %v1004_v31 = vpack.c.bf16 %v994_v23, %v993_v5 }
 0x448   :  { %v1003_v6 = vpack.c.bf16 %v992_v28, %v991_v30 }
 0x44a   :  { %1673 = vmatpush3.bf16.msra.mxu1 %v1003_v6 }
 0x44b   :  { %1674 = vmatprep.subr.bf16.mxu1 %v1767_v53 }
 0x44e   :  { %1675 = vmatpush3.bf16.msra.mxu1 %v1004_v31 }
 0x44f   :  { %1676 = vmatprep.subr.bf16.mxu1 %v1767_v53 }
 0x450   :  { %v1662_v7 = vpop.f32.mrb[44].mxu0 }
 0x451   :  { %v977_v10 = vadd.f32 %v1662_v7, %v2222_v21  ;;  %v968_v29 = vpop.f32.mrb[45].mxu0 }
 0x452   :  { %v969_v36 = vadd.f32 %v2222_v21, %v968_v29  ;;  %v1663_v11 = vpop.f32.mrb[46].mxu0 }
 0x453   :  { %v980_v32 = vadd.f32 %v1663_v11, %v2222_v21  ;;  %v971_v12 = vpop.f32.mrb[47].mxu0  ;;  %v997_v37 = vmax.f32 %v977_v10, 0.0 }
 0x454   :  { %v972_v19 = vadd.f32 %v2222_v21, %v971_v12  ;;  %v995_v42 = vmax.f32 %v969_v36, 0.0  ;;  %v1048_v21 = vpack.c.bf16 %v595_v20, %v592_v48 }
 0x455   :  { %v998_v43 = vmax.f32 %v980_v32, 0.0 }
 0x456   :  { %v996_v45 = vmax.f32 %v972_v19, 0.0 }
 0x457   :  { %v1006_v46 = vpack.c.bf16 %v998_v43, %v997_v37 }
 0x458   :  { %v1005_v47 = vpack.c.bf16 %v996_v45, %v995_v42 }
 0x45a   :  { %1677 = vmatpush3.bf16.msra.mxu1 %v1005_v47 }
 0x45b   :  { %1678 = vmatprep.subr.bf16.mxu1 %v1767_v53 }
 0x45e   :  { %1679 = vmatpush3.bf16.msra.mxu1 %v1006_v46 }
 0x45f   :  { %1684 = vmatprep.subr.bf16.mxu1 %v1767_v53 }
 0x461   :  { %1681 = vmatmul.mubr.bf16.vlgmr.msra.gmra.mrb[36].mxu1 %v2178_v27  ;;  %v1758_v27 = vld [vmem:[%s2317_s12] sm:$0xff]  }
 0x462   :  { %1700 = vmatprep.mubr.msk.bf16.mxu1 %vm1768_vm0, %v1767_v53  ;;  %1685 = vmatpush3.bf16.msra.mxu1 %v1758_v27 }
 0x463   :  { %1686 = vmatprep.subr.bf16.mxu1 %v1767_v53 }
 0x466   :  { %1687 = vmatpush3.bf16.msra.mxu1 %v1759_v33 }
 0x467   :  { %1688 = vmatprep.subr.bf16.mxu1 %v1767_v53 }
 0x46a   :  { %1689 = vmatpush3.bf16.msra.mxu1 %v1760_v34 }
 0x46b   :  { %1690 = vmatprep.subr.bf16.mxu1 %v1767_v53 }
 0x46e   :  { %1691 = vmatpush3.bf16.msra.mxu1 %v1761_v35 }
 0x46f   :  { %1692 = vmatprep.subr.bf16.mxu1 %v1767_v53 }
 0x472   :  { %1693 = vmatpush3.bf16.msra.mxu1 %v1762_v60 }
 0x473   :  { %1694 = vmatprep.subr.bf16.mxu1 %v1767_v53 }
 0x476   :  { %1695 = vmatpush3.bf16.msra.mxu1 %v1763_v4 }
 0x477   :  { %1696 = vmatprep.subr.bf16.mxu1 %v1767_v53 }
 0x47a   :  { %1697 = vmatpush3.bf16.msra.mxu1 %v1764_v8 }
 0x47b   :  { %1698 = vmatprep.subr.bf16.mxu1 %v1767_v53 }
 0x47e   :  { %1699 = vmatpush3.bf16.msra.mxu1 %v1765_v38 }
 0x534   :  { %v1041_v0 = vpop.f32.mrb[36].mxu1 }
 0x535   :  { %v1682_v2 = vpop.f32.mrb[37].mxu1 }
 0x536   :  { %v1044_v3 = vpop.f32.mrb[38].mxu1 }
 0x537   :  { %v1049_v1 = vpack.c.bf16 %v1044_v3, %v1041_v0  ;;  %v1683_v63 = vpop.f32.mrb[39].mxu1 }
 0x539   :  { %1217 = vmatprep.mubr.bf16.mxu0 %v1049_v1 }
 0x53a   :  { %1218 = vmatmul.mubr.bf16.vlgmr.msra.gmra.mrb[48].mxu0 %v1048_v21 }
 0x60d   :  { %v1501_v39 = vpop.f32.mrb[48].mxu0 }
 0x60e   :  { %v1502_v49 = vpop.f32.mrb[49].mxu0 }
 0x60f   :  { %v1503_v9 = vadd.f32 %v1502_v49, %v1501_v39  ;;  %v1504_v16 = vpop.f32.mrb[50].mxu0 }
 0x610   :  { %v1505_v14 = vpop.f32.mrb[51].mxu0 }
 0x611   :  { %v1220_v17 = vadd.f32 %v1503_v9, %v1385_v40  ;;  %v1506_v51 = vadd.f32 %v1505_v14, %v1504_v16 }
 0x613   :  { %v1223_v52 = vadd.f32 %v1506_v51, %v1385_v40  ;;  %v1226_v41 = vmax.f32 %v1220_v17, 0.0 }
 0x615   :  { %v1227_v44 = vmax.f32 %v1223_v52, 0.0 }
 0x617   :  { %v1228_v53 = vpack.c.bf16 %v1227_v44, %v1226_v41 }
 0x619   :  { %1701 = vmatmul.mubr.bf16.vlgmr.msra.gmra.mrb[40].mxu1 %v1228_v53 }
 0x6ec   :  { %v1334_v55 = vpop.f32.mrb[40].mxu1 }
 0x6ed   :  { %v1335_v15 = vadd.f32 %v1402_v54, %v1334_v55  ;;  %v1702_v13 = vpop.f32.mrb[41].mxu1 }
 0x6ee   :  { %v1337_v18 = vpop.f32.mrb[42].mxu1 }
 0x6ef   :  { %1341 = vst [vmem:[%s2320_s14] sm:$0xff] %v1335_v15  ;;  %v1338_v22 = vadd.f32 %v1402_v54, %v1337_v18  ;;  %v1703_v56 = vpop.f32.mrb[43].mxu1 }
 0x6f1   :  { %1342 = vst [vmem:[%s2320_s14 + $0x8] sm:$0xff] %v1338_v22 }

</bundles_post_ra>
